<compile_context>
chip_gen: v5e
topology: v5e:2x2
jax: 0.10.0
libtpu: 0.0.40
codegen_flags: <defaults>
</compile_context>

<pallas_src>
import math

import jax
import jax.numpy as jnp
from jax.experimental import pallas as pl
from jax.experimental.pallas import tpu as pltpu


def _get_softmax_dim(ndim: int) -> int:
    if ndim == 0 or ndim == 1 or ndim == 3:
        return 0
    return 1


# Per-block VMEM budget; with double-buffered in+out this stays well under the
# 32 MiB scoped default (and v7x's 64 MiB physical VMEM).
_BLOCK_BUDGET_BYTES = 2 << 20


def _softmax_last_kernel(x_ref, o_ref):
    # Block (tm, D): softmax along the last (lane) axis.
    x = x_ref[...].astype(jnp.float32)
    e = jnp.exp(x)                                # EUP
    s = jnp.sum(e, axis=-1, keepdims=True)        # XLU lane reduce
    o_ref[...] = (e * pl.reciprocal(s)).astype(o_ref.dtype)  # recip + VPU mul


def _softmax_mid_kernel(x_ref, o_ref):
    # Block (tp, C, tpost): softmax along axis 1 (sublanes); lanes stay dense.
    x = x_ref[...].astype(jnp.float32)
    e = jnp.exp(x)                                # EUP
    s = jnp.sum(e, axis=1, keepdims=True)         # XLU sublane reduce
    o_ref[...] = (e * pl.reciprocal(s)).astype(o_ref.dtype)


def _compiler_params(grid) -> pltpu.CompilerParams:
    # Only shard across TensorCores (megacore) when there is real block
    # parallelism; a single-block latency-bound kernel gains nothing.
    total = 1
    for g in grid:
        total *= g
    sem = tuple("parallel" if total > 1 else "arbitrary" for _ in grid)
    return pltpu.CompilerParams(dimension_semantics=sem)


def _softmax_last_axis(x2: jax.Array) -> jax.Array:
    """Row-wise softmax over the last axis of a (rows, D) array."""
    rows, d = x2.shape
    row_bytes = max(1, d * x2.dtype.itemsize)
    if rows * row_bytes <= _BLOCK_BUDGET_BYTES:
        tm = rows                                   # one block, grid=(1,)
    else:
        # Tile rows to a sublane multiple; the whole reduction axis D stays
        # inside one block.
        tm = max(8, (_BLOCK_BUDGET_BYTES // row_bytes) // 8 * 8)
        tm = min(tm, rows)
        # TODO(synk): if a single (8, D) slab exceeds VMEM (huge D), switch to
        # a two-pass (partial-sum then divide) kernel over a tiled D axis.
    pad = (-rows) % tm
    xp = jnp.pad(x2, ((0, pad), (0, 0))) if pad else x2
    grid = (xp.shape[0] // tm,)
    out = pl.pallas_call(
        _softmax_last_kernel,
        out_shape=jax.ShapeDtypeStruct(xp.shape, x2.dtype),
        grid_spec=pltpu.PrefetchScalarGridSpec(
            num_scalar_prefetch=0,
            grid=grid,
            in_specs=[pl.BlockSpec((tm, d), lambda i: (i, 0))],
            out_specs=pl.BlockSpec((tm, d), lambda i: (i, 0)),
        ),
        compiler_params=_compiler_params(grid),
    )(xp)
    return out[:rows] if pad else out


def _softmax_mid_axis(x3: jax.Array) -> jax.Array:
    """Softmax over axis 1 of a (pre, C, post) array; `post` stays on lanes."""
    pre, c, post = x3.shape
    itemsize = x3.dtype.itemsize
    slab_bytes = max(1, c * post * itemsize)

    if pre * slab_bytes <= _BLOCK_BUDGET_BYTES:
        tp, tpost = pre, post                       # one block, grid=(1, 1)
    elif slab_bytes <= _BLOCK_BUDGET_BYTES:
        tp, tpost = max(1, _BLOCK_BUDGET_BYTES // slab_bytes), post
    else:
        # One (1, C, post) slab exceeds the budget: also tile the lane axis in
        # multiples of 128 (the reduction axis C stays whole inside a block).
        tp = 1
        col_bytes = max(1, c * itemsize)
        tpost = max(128, (_BLOCK_BUDGET_BYTES // col_bytes) // 128 * 128)
        tpost = min(tpost, ((post + 127) // 128) * 128)

    pad_p = (-pre) % tp
    pad_q = (-post) % tpost
    if pad_p or pad_q:
        xp = jnp.pad(x3, ((0, pad_p), (0, 0), (0, pad_q)))
    else:
        xp = x3
    grid = (xp.shape[0] // tp, xp.shape[2] // tpost)
    out = pl.pallas_call(
        _softmax_mid_kernel,
        out_shape=jax.ShapeDtypeStruct(xp.shape, x3.dtype),
        grid_spec=pltpu.PrefetchScalarGridSpec(
            num_scalar_prefetch=0,
            grid=grid,
            in_specs=[pl.BlockSpec((tp, c, tpost), lambda i, j: (i, 0, j))],
            out_specs=pl.BlockSpec((tp, c, tpost), lambda i, j: (i, 0, j)),
        ),
        compiler_params=_compiler_params(grid),
    )(xp)
    if pad_p or pad_q:
        out = out[:pre, :, :post]
    return out


def softmax(x: jax.Array, dim=None) -> jax.Array:
    """Mirror of Mytorch Softmax.forward (un-stabilized exp / sum)."""
    if dim is None:
        dim = _get_softmax_dim(x.ndim)
    if x.ndim == 0:
        return jnp.ones_like(x)  # softmax of a scalar is 1
    dim = dim % x.ndim
    shape = x.shape
    pre = int(math.prod(shape[:dim]))
    c = shape[dim]
    post = int(math.prod(shape[dim + 1:]))
    if post == 1:
        # Softmax axis is (effectively) the last one: reduce over lanes.
        y = _softmax_last_axis(x.reshape(pre, c))
    else:
        # Natural layout: reduce over the middle (channel) axis in-kernel,
        # trailing spatial dims stay lane-dense. Reshapes are free, no transpose.
        y = _softmax_mid_axis(x.reshape(pre, c, post))
    return y.reshape(shape)


if __name__ == "__main__":
    key = jax.random.PRNGKey(0)

    # NCHW input; ndim=4 -> softmax over dim=1 (channels), matching PyTorch.
    x = jax.random.normal(key, (2, 4, 16, 16), dtype=jnp.float32)
    y = jax.block_until_ready(softmax(x, dim=None))
    e = jnp.exp(x)
    ref = e / jnp.sum(e, axis=1, keepdims=True)
    assert y.shape == x.shape and y.dtype == x.dtype
    assert jnp.allclose(y, ref, rtol=1e-5, atol=1e-5)

    # Last-axis path (ndim=2 -> dim=1).
    x2 = jax.random.normal(jax.random.PRNGKey(1), (8, 32), dtype=jnp.float32)
    y2 = jax.block_until_ready(softmax(x2, dim=None))
    e2 = jnp.exp(x2)
    ref2 = e2 / jnp.sum(e2, axis=1, keepdims=True)
    assert jnp.allclose(y2, ref2, rtol=1e-5, atol=1e-5)

    # ndim=3 -> dim=0 (pre=1, reduce over leading axis, lane-dense trailing dims).
    x3 = jax.random.normal(jax.random.PRNGKey(2), (4, 8, 128), dtype=jnp.float32)
    y3 = jax.block_until_ready(softmax(x3, dim=None))
    e3 = jnp.exp(x3)
    ref3 = e3 / jnp.sum(e3, axis=0, keepdims=True)
    assert jnp.allclose(y3, ref3, rtol=1e-5, atol=1e-5)

    print("KERNEL_OK")
</pallas_src>

<mosaic_0001>
module attributes {stable_mosaic.version = 11 : i64} {
  func.func @_softmax_mid_kernel(%arg0: i32, %arg1: i32, %arg2: memref<2x4x256xf32, #tpu.memory_space<vmem>>, %arg3: memref<2x4x256xf32, #tpu.memory_space<vmem>>) attributes {dimension_semantics = [#tpu.dimension_semantics<arbitrary>, #tpu.dimension_semantics<arbitrary>], iteration_bounds = array<i64: 1, 1>, scalar_prefetch = 0 : i64, scratch_operands = 0 : i64, tpu.core_type = #tpu.core_type<tc>, window_params = [{transform_indices = @transform_0, window_bounds = array<i64: 2, 4, 256>}, {transform_indices = @transform_1, window_bounds = array<i64: 2, 4, 256>}]} {
    %c0 = arith.constant 0 : index
    %c0_0 = arith.constant 0 : index
    %c0_1 = arith.constant 0 : index
    %0 = vector.load %arg2[%c0, %c0_0, %c0_1] : memref<2x4x256xf32, #tpu.memory_space<vmem>>, vector<2x4x256xf32>
    %1 = math.exp %0 : vector<2x4x256xf32>
    %cst = arith.constant dense<0.000000e+00> : vector<2x256xf32>
    %2 = vector.multi_reduction <add>, %1, %cst [1] : vector<2x4x256xf32> to vector<2x256xf32>
    %3 = vector.shape_cast %2 : vector<2x256xf32> to vector<2x1x256xf32>
    %4 = tpu.reciprocal %3 : vector<2x1x256xf32> -> vector<2x1x256xf32>
    %5 = vector.broadcast %4 : vector<2x1x256xf32> to vector<2x4x256xf32>
    %6 = arith.mulf %1, %5 : vector<2x4x256xf32>
    %c0_2 = arith.constant 0 : index
    %c0_3 = arith.constant 0 : index
    %c0_4 = arith.constant 0 : index
    %7 = vector.load %arg3[%c0_2, %c0_3, %c0_4] : memref<2x4x256xf32, #tpu.memory_space<vmem>>, vector<2x4x256xf32>
    tpu.vector_store %arg3[%c0_2, %c0_3, %c0_4], %6 {strides = array<i32>} : memref<2x4x256xf32, #tpu.memory_space<vmem>>, vector<2x4x256xf32>,
    return
  }
  func.func @transform_0(%arg0: i32, %arg1: i32) -> (i32, i32, i32) {
    %c0_i32 = arith.constant 0 : i32
    %c0_i32_0 = arith.constant 0 : i32
    return %arg0, %c0_i32, %arg1 : i32, i32, i32
  }
  func.func @transform_1(%arg0: i32, %arg1: i32) -> (i32, i32, i32) {
    %c0_i32 = arith.constant 0 : i32
    %c0_i32_0 = arith.constant 0 : i32
    return %arg0, %c0_i32, %arg1 : i32, i32, i32
  }
}

</mosaic_0001>

<bundles_post_ra>
// kernel: tpu_custom_call.1
= control target key start
LH: loop header
LB: loop body
LE: loop exit
PB: predicated region body
PF: predicated region fallthrough
CT: control target
= control target key end

     0   :  { %6 = vsyncpa [#allocation3], 0  ;;  %s293_s0 = inlined_call_operand.hbm [shape: f32[2,4,256], index: 0, kind: input, shape index: {}]   ;;  %s294_s1 = inlined_call_operand.hbm [shape: f32[2,4,256], index: 1, kind: output, shape index: {}]  }
   0x1   :  { %7 = vsyncpa [#allocation4], 0  ;;  %s12_s8 = sshll.u32 %s293_s0, 4  ;;  %s230_s9 = smov [#allocation2]   ;;  %s13_s8 = int_to_ptr.hbm [resolvable:$true] %s12_s8 }
   0x2   :  { %s14_s10 = sshll.u32 %s230_s9, 4  ;;  %s231_s11 = smov 128   ;;  %s15_s10 = int_to_ptr.vmem [resolvable:$true] %s14_s10 }
   0x3   :  { %s232_s12 = smov 8  }
   0x4   :  { %20 = dma.hbm_to_vmem [thread:$0]  %s13_s8, 256, %s15_s10, [#allocation3], %s231_s11, %s231_s11, %s232_s12  }
   0x5   :  { %226 = dma.done.wait [#allocation3], 256  }
   0x6   :  { %227 = vsyncadd [#allocation3], 4294967040  ;;  %v25_v0 = vld [vmem:[#allocation2] sm:$0xff]  ;;  %v26_v1 = vld [vmem:[#allocation2 + $0x8] sm:$0xff]  ;;  %vm44_vm0 = vcmask 1043456   ;;  %s233_s0 = smov [#allocation5]  }
   0x7   :  { %v27_v2 = vmul.f32 1.442695, %v25_v0  ;;  %v29_v3 = vmul.f32 1.442695, %v26_v1  ;;  %s147_s13 = sshll.u32 %s233_s0, 4  ;;  %s149_s16 = sshll.u32 %s294_s1, 4  ;;  %s148_s13 = int_to_ptr.vmem [resolvable:$true] %s147_s13  ;;  %s150_s16 = int_to_ptr.hbm [resolvable:$true] %s149_s16 }
   0x9   :  { %166 = vpow2.f32 %v27_v2 }
   0xa   :  { %168 = vpow2.f32 %v29_v3 }
   0xf   :  { %v250_v4 = vpop.eup %166 }
  0x10   :  { %v252_v5 = vpop.eup %168  ;;  %33 = vst [vmem:[#allocation1] ss:$2 sm:$0xff] %v250_v4 }
  0x11   :  { %37 = vst [vmem:[#allocation1 + $0x10] ss:$2 sm:$0xff] %v252_v5 }
  0x17   :  { %v34_v6 = vld.sshfl [vmem:[#allocation1] sm:$0xff pattern:$0x75316420]  ;;  %v35_v7 = vld.sshfl [vmem:[#allocation1 + $0x8] sm:$0xff pattern:$0x75316420] }
  0x18   :  { %v38_v8 = vld.sshfl [vmem:[#allocation1 + $0x10] sm:$0xff pattern:$0x75316420]  ;;  %v39_v9 = vld.sshfl [vmem:[#allocation1 + $0x18] sm:$0xff pattern:$0x75316420] }
  0x19   :  { %v45_v10 = vsel %vm44_vm0, %v34_v6, 0.0  ;;  %v52_v11 = vsel %vm44_vm0, %v35_v7, 0.0  ;;  %v59_v12 = vsel %vm44_vm0, %v38_v8, 0.0  ;;  %v66_v13 = vsel %vm44_vm0, %v39_v9, 0.0 }
  0x1a   :  { %v46_v14 = vrot.slane %v45_v10, 4  ;;  %v53_v15 = vrot.slane %v52_v11, 4  ;;  %v60_v16 = vrot.slane %v59_v12, 4  ;;  %v67_v17 = vrot.slane %v66_v13, 4 }
  0x1c   :  { %v47_v18 = vadd.f32 %v46_v14, %v45_v10  ;;  %v54_v19 = vadd.f32 %v53_v15, %v52_v11  ;;  %v61_v20 = vadd.f32 %v60_v16, %v59_v12  ;;  %v68_v21 = vadd.f32 %v67_v17, %v66_v13 }
  0x1e   :  { %v48_v22 = vrot.slane %v47_v18, 2  ;;  %v55_v23 = vrot.slane %v54_v19, 2  ;;  %v62_v24 = vrot.slane %v61_v20, 2  ;;  %v69_v25 = vrot.slane %v68_v21, 2 }
  0x20   :  { %v49_v26 = vadd.f32 %v48_v22, %v47_v18  ;;  %v56_v27 = vadd.f32 %v55_v23, %v54_v19  ;;  %v70_v28 = vadd.f32 %v69_v25, %v68_v21  ;;  %v63_v29 = vadd.f32 %v62_v24, %v61_v20 }
  0x22   :  { %v50_v30 = vrot.slane %v49_v26, 1  ;;  %v57_v31 = vrot.slane %v56_v27, 1  ;;  %v64_v32 = vrot.slane %v63_v29, 1  ;;  %v71_v33 = vrot.slane %v70_v28, 1 }
  0x24   :  { %v51_v34 = vadd.f32 %v50_v30, %v49_v26  ;;  %v58_v35 = vadd.f32 %v57_v31, %v56_v27  ;;  %v260_v36 = vadd.f32 %v64_v32, %v63_v29  ;;  %v72_v37 = vadd.f32 %v71_v33, %v70_v28 }
  0x26   :  { %170 = vrcp.f32 %v51_v34  ;;  %v84_v42 = vand.u32 2147483648, %v51_v34  ;;  %vm78_vm1 = vweird.f32 %v51_v34  ;;  %v82_v47 = vand.u32 2147483647, %v51_v34 }
  0x27   :  { %172 = vrcp.f32 %v58_v35  ;;  %vm92_vm2 = vweird.f32 %v58_v35  ;;  %v98_v49 = vand.u32 2147483648, %v58_v35  ;;  %v96_v55 = vand.u32 2147483647, %v58_v35 }
  0x28   :  { %174 = vrcp.f32 %v260_v36  ;;  %v85_v53 = vor.u32 1.1754944e-38, %v84_v42  ;;  %vm106_vm5 = vweird.f32 %v260_v36  ;;  %v126_v62 = vand.u32 2147483648, %v72_v37 }
  0x29   :  { %176 = vrcp.f32 %v72_v37  ;;  %v99_v61 = vor.u32 1.1754944e-38, %v98_v49  ;;  %v124_v1 = vand.u32 2147483647, %v72_v37  ;;  %vm97_vm10 = vcmp.eq.f32.partialorder %v96_v55, 8.507059e+37 }
  0x2a   :  { %v112_v6 = vand.u32 2147483648, %v260_v36  ;;  %v110_v9 = vand.u32 2147483647, %v260_v36  ;;  %vm120_vm12 = vweird.f32 %v72_v37  ;;  %vm83_vm13 = vcmp.eq.f32.partialorder %v82_v47, 8.507059e+37 }
  0x2b   :  { %v127_v12 = vor.u32 1.1754944e-38, %v126_v62  ;;  %vm125_vm15 = vcmp.eq.f32.partialorder %v124_v1, 8.507059e+37 }
  0x2c   :  { %v171_v38 = vpop.eup %170  ;;  %v113_v17 = vor.u32 1.1754944e-38, %v112_v6 }
  0x2d   :  { %v173_v39 = vpop.eup %172  ;;  %v74_v40 = vmul.f32 %v171_v38, %v51_v34  ;;  %vm79_vm3 = vweird.f32 %v171_v38 }
  0x2e   :  { %v175_v41 = vpop.eup %174  ;;  %v88_v43 = vmul.f32 %v173_v39, %v58_v35  ;;  %vm93_vm4 = vweird.f32 %v173_v39  ;;  %vm266_vm6 = vmor %vm78_vm1, %vm79_vm3  ;;  %vm111_vm1 = vcmp.eq.f32.partialorder %v110_v9, 8.507059e+37 }
  0x2f   :  { %v75_v44 = vsub.f32 1.0, %v74_v40  ;;  %v102_v45 = vmul.f32 %v175_v41, %v260_v36  ;;  %v177_v46 = vpop.eup %176  ;;  %vm107_vm7 = vweird.f32 %v175_v41  ;;  %vm94_vm8 = vmor %vm92_vm2, %vm93_vm4 }
  0x30   :  { %v89_v48 = vsub.f32 1.0, %v88_v43  ;;  %v116_v52 = vmul.f32 %v177_v46, %v72_v37  ;;  %vm121_vm9 = vweird.f32 %v177_v46  ;;  %vm276_vm11 = vmor %vm106_vm5, %vm107_vm7 }
  0x31   :  { %v76_v50 = vmul.f32 %v171_v38, %v75_v44  ;;  %v103_v51 = vsub.f32 1.0, %v102_v45  ;;  %vm122_vm14 = vmor %vm120_vm12, %vm121_vm9 }
  0x32   :  { %v90_v54 = vmul.f32 %v173_v39, %v89_v48  ;;  %v117_v58 = vsub.f32 1.0, %v116_v52 }
  0x33   :  { %v77_v56 = vadd.f32 %v171_v38, %v76_v50  ;;  %v104_v57 = vmul.f32 %v175_v41, %v103_v51 }
  0x34   :  { %v91_v60 = vadd.f32 %v173_v39, %v90_v54  ;;  %v118_v0 = vmul.f32 %v177_v46, %v117_v58 }
  0x35   :  { %v105_v63 = vadd.f32 %v175_v41, %v104_v57  ;;  %v81_v2 = vsel %vm266_vm6, %v171_v38, %v77_v56 }
  0x36   :  { %v95_v3 = vsel %vm94_vm8, %v173_v39, %v91_v60  ;;  %v119_v10 = vadd.f32 %v177_v46, %v118_v0  ;;  %v86_v13 = vsel %vm83_vm13, %v85_v53, %v81_v2 }
  0x37   :  { %v100_v7 = vsel %vm97_vm10, %v99_v61, %v95_v3  ;;  %v109_v14 = vsel %vm276_vm11, %v175_v41, %v105_v63 }
  0x38   :  { %v133_v11 = vrot.slane %v100_v7, 4  ;;  %v123_v15 = vsel %vm122_vm14, %v177_v46, %v119_v10  ;;  %v114_v21 = vsel %vm111_vm1, %v113_v17, %v109_v14 }
  0x39   :  { %v128_v18 = vsel %vm125_vm15, %v127_v12, %v123_v15 }
  0x3a   :  { %v135_v16 = vsel %vm44_vm0, %v86_v13, %v133_v11  ;;  %v134_v20 = vrot.slane %v128_v18, 4 }
  0x3b   :  { %v139_v19 = vmul.f32 %v250_v4, %v135_v16 }
  0x3c   :  { %v136_v22 = vsel %vm44_vm0, %v114_v21, %v134_v20 }
  0x3d   :  { %141 = vst [vmem:[#allocation5] sm:$0xff] %v139_v19  ;;  %v140_v23 = vmul.f32 %v252_v5, %v136_v22 }
  0x3f   :  { %142 = vst [vmem:[#allocation5 + $0x8] sm:$0xff] %v140_v23 }
  0x40   :  { %155 = dma.vmem_to_hbm [thread:$0]  %s148_s13, 256, %s150_s16, [#allocation4], %s231_s11, %s231_s11, %s232_s12  }
  0x41   :  { %228 = dma.done.wait [#allocation4], 256  }
  0x42   :  { %229 = vsyncadd [#allocation4], 4294967040 }
  0x43   :  { %160 = vsyncpa [#allocation3], 1 }
  0x44   :  { %161 = vsyncpa [#allocation4], 1 }

</bundles_post_ra>
